<compile_context>
chip_gen: v7x
topology: tpu7x:2x2x1
jax: 0.10.0
libtpu: 0.0.40
codegen_flags: <defaults>
</compile_context>

<pallas_src>
import math
import jax
import jax.numpy as jnp
from jax import lax
from jax.experimental import pallas as pl
from jax.experimental.pallas import tpu as pltpu

# ---------------- config (small, consistent with the module) ----------------
B = 2           # batch
T = 8           # sequence length (== block_size)
C = 32          # embed_dim
H = 4           # n_head
D = C // H      # head dim
HID = 4 * C     # MLP hidden
EPS = 1e-5      # nn.LayerNorm default eps

# packed-parameter layout (single (P_ROWS, P_COLS) f32 operand)
P_COLS = 3 * C + C + HID          # 256: [ wqkv | wproj | wfc ] column blocks
BIAS_ROW = C + HID                # 160: row holding [ bqkv | bproj | bfc ]
BMP_ROW = BIAS_ROW + 1            # 161: row holding bmp
P_ROWS = ((BMP_ROW + 1 + 7) // 8) * 8   # 168 (sublane-aligned)


def block_kernel(x_ref, p_ref, out_ref):
    x = x_ref[...].astype(jnp.float32)                       # (B*T, C)

    def norm(h):  # LayerNorm without affine (affine folded into next linear)
        mu = jnp.mean(h, axis=-1, keepdims=True)
        var = jnp.mean((h - mu) * (h - mu), axis=-1, keepdims=True)
        return (h - mu) * lax.rsqrt(var + EPS)

    # ---- static slices of the packed parameter block ----
    wqkv = p_ref[0:C, 0:3 * C]                               # (C, 3C) ln1 & 1/sqrt(D) folded
    wproj = p_ref[0:C, 3 * C:4 * C]                          # (C, C)
    wfc = p_ref[0:C, 4 * C:4 * C + HID]                      # (C, HID) ln2 folded
    wmp = p_ref[C:C + HID, 0:C]                              # (HID, C)
    bqkv = p_ref[BIAS_ROW:BIAS_ROW + 1, 0:3 * C]             # (1, 3C)
    bproj = p_ref[BIAS_ROW:BIAS_ROW + 1, 3 * C:4 * C]        # (1, C)
    bfc = p_ref[BIAS_ROW:BIAS_ROW + 1, 4 * C:4 * C + HID]    # (1, HID)
    bmp = p_ref[BMP_ROW:BMP_ROW + 1, 0:C]                    # (1, C)

    # ---------------- attention branch ----------------
    qkv = jnp.dot(norm(x), wqkv,
                  preferred_element_type=jnp.float32) + bqkv  # (B*T, 3C)

    row = lax.broadcasted_iota(jnp.int32, (T, T), 0)
    col = lax.broadcasted_iota(jnp.int32, (T, T), 1)
    causal = (row >= col)[None, :, :]                         # (1, T, T)

    ys = []
    for b in range(B):                                        # tiny static unroll
        qkv_b = qkv[b * T:(b + 1) * T, :]                     # (T, 3C)
        qb = qkv_b[:, 0 * C:1 * C].reshape(T, H, D)
        kb = qkv_b[:, 1 * C:2 * C].reshape(T, H, D)
        vb = qkv_b[:, 2 * C:3 * C].reshape(T, H, D)

        att = jnp.einsum('thd,shd->hts', qb, kb,
                         preferred_element_type=jnp.float32)  # (H, T, T), already scaled
        att = jnp.where(causal, att, -1e30)
        att = jnp.exp(att - jnp.max(att, axis=-1, keepdims=True))
        att = att * pl.reciprocal(jnp.sum(att, axis=-1, keepdims=True), approx=True)

        yb = jnp.einsum('hts,shd->thd', att, vb,
                        preferred_element_type=jnp.float32)   # (T, H, D)
        ys.append(yb.reshape(T, C))
    y = jnp.concatenate(ys, axis=0)                           # (B*T, C)

    x = x + jnp.dot(y, wproj, preferred_element_type=jnp.float32) + bproj

    # ---------------- MLP branch ----------------
    f = jnp.dot(norm(x), wfc,
                preferred_element_type=jnp.float32) + bfc      # (B*T, HID)
    c0 = math.sqrt(2.0 / math.pi)
    g = 0.5 * f * (1.0 + jnp.tanh(c0 * (f + 0.044715 * f * f * f)))   # GELU(tanh)
    x = x + jnp.dot(g, wmp, preferred_element_type=jnp.float32) + bmp

    out_ref[...] = x.astype(out_ref.dtype)


def transformer_block(x, packed_params):
    """x: (B, T, C); packed_params: (P_ROWS, P_COLS) from pack_params()."""
    Bx, Tx, Cx = x.shape
    x2d = x.reshape(Bx * Tx, Cx)                 # free bitcast in HBM
    out2d = pl.pallas_call(
        block_kernel,
        out_shape=jax.ShapeDtypeStruct((Bx * Tx, Cx), x.dtype),
        in_specs=[
            pl.BlockSpec(memory_space=pltpu.MemorySpace.VMEM),   # activations
            pl.BlockSpec(memory_space=pltpu.MemorySpace.VMEM),   # packed params
        ],
        out_specs=pl.BlockSpec(memory_space=pltpu.MemorySpace.VMEM),
    )(x2d, packed_params)
    return out2d.reshape(Bx, Tx, Cx)


# ---------------- offline parameter folding + packing ----------------
def pack_params(params):
    (ln1_w, ln1_b, wqkv, bqkv, wproj, bproj,
     ln2_w, ln2_b, wfc, bfc, wmp, bmp) = params

    # fold LN1 affine into the qkv projection
    wqkv_f = ln1_w.reshape(C, 1) * wqkv                       # diag(ln1_w) @ W
    bqkv_f = ln1_b.reshape(1, C) @ wqkv + bqkv                # (1, 3C)
    # fold 1/sqrt(D) attention scale into the Q columns
    scale = 1.0 / math.sqrt(D)
    wqkv_f = wqkv_f.at[:, 0:C].multiply(scale)
    bqkv_f = bqkv_f.at[:, 0:C].multiply(scale)
    # fold LN2 affine into the MLP fc
    wfc_f = ln2_w.reshape(C, 1) * wfc
    bfc_f = ln2_b.reshape(1, C) @ wfc + bfc

    P = jnp.zeros((P_ROWS, P_COLS), jnp.float32)
    P = P.at[0:C, 0:3 * C].set(wqkv_f)
    P = P.at[0:C, 3 * C:4 * C].set(wproj)
    P = P.at[0:C, 4 * C:4 * C + HID].set(wfc_f)
    P = P.at[C:C + HID, 0:C].set(wmp)
    P = P.at[BIAS_ROW, 0:3 * C].set(bqkv_f[0])
    P = P.at[BIAS_ROW, 3 * C:4 * C].set(bproj[0])
    P = P.at[BIAS_ROW, 4 * C:4 * C + HID].set(bfc_f[0])
    P = P.at[BMP_ROW, 0:C].set(bmp[0])
    return P


# ---------------- pure-JAX reference (unfolded, PyTorch semantics) ----------------
def reference_block(x, params):
    (ln1_w, ln1_b, wqkv, bqkv, wproj, bproj,
     ln2_w, ln2_b, wfc, bfc, wmp, bmp) = params

    def ln(h, w, b):
        mu = jnp.mean(h, axis=-1, keepdims=True)
        var = jnp.mean((h - mu) ** 2, axis=-1, keepdims=True)
        return (h - mu) / jnp.sqrt(var + EPS) * w[0] + b[0]

    h = ln(x, ln1_w, ln1_b)
    qkv = h @ wqkv + bqkv[0]
    q, k, v = jnp.split(qkv, 3, axis=-1)
    q = q.reshape(B, T, H, D).transpose(0, 2, 1, 3)
    k = k.reshape(B, T, H, D).transpose(0, 2, 1, 3)
    v = v.reshape(B, T, H, D).transpose(0, 2, 1, 3)
    att = jnp.einsum('bhtd,bhsd->bhts', q, k) / math.sqrt(D)
    mask = jnp.tril(jnp.ones((T, T), bool))
    att = jnp.where(mask[None, None], att, -jnp.inf)
    att = jax.nn.softmax(att, axis=-1)
    y = jnp.einsum('bhts,bhsd->bhtd', att, v)
    y = y.transpose(0, 2, 1, 3).reshape(B, T, C)
    x = x + (y @ wproj + bproj[0])

    h2 = ln(x, ln2_w, ln2_b)
    f = h2 @ wfc + bfc[0]
    c0 = math.sqrt(2.0 / math.pi)
    g = 0.5 * f * (1.0 + jnp.tanh(c0 * (f + 0.044715 * f ** 3)))
    x = x + (g @ wmp + bmp[0])
    return x


def init_params(key):
    ks = jax.random.split(key, 8)
    s = 0.05
    ln1_w = jnp.ones((1, C), jnp.float32)
    ln1_b = jnp.zeros((1, C), jnp.float32)
    ln2_w = jnp.ones((1, C), jnp.float32)
    ln2_b = jnp.zeros((1, C), jnp.float32)
    wqkv = s * jax.random.normal(ks[0], (C, 3 * C), jnp.float32)
    bqkv = s * jax.random.normal(ks[1], (1, 3 * C), jnp.float32)
    wproj = s * jax.random.normal(ks[2], (C, C), jnp.float32)
    bproj = s * jax.random.normal(ks[3], (1, C), jnp.float32)
    wfc = s * jax.random.normal(ks[4], (C, HID), jnp.float32)
    bfc = s * jax.random.normal(ks[5], (1, HID), jnp.float32)
    wmp = s * jax.random.normal(ks[6], (HID, C), jnp.float32)
    bmp = s * jax.random.normal(ks[7], (1, C), jnp.float32)
    return (ln1_w, ln1_b, wqkv, bqkv, wproj, bproj,
            ln2_w, ln2_b, wfc, bfc, wmp, bmp)


if __name__ == "__main__":
    key = jax.random.PRNGKey(0)
    kx, kp = jax.random.split(key)
    x = jax.random.normal(kx, (B, T, C), jnp.float32)
    params = init_params(kp)
    packed = pack_params(params)          # done once at parameter construction

    out = transformer_block(x, packed)
    out = jax.block_until_ready(out)

    ref = reference_block(x, params)
    assert out.shape == (B, T, C)
    # slightly relaxed tolerance: approximate (EUP) reciprocal in the softmax
    assert jnp.allclose(out, ref, atol=2e-3, rtol=2e-3), \
        f"max abs diff {jnp.max(jnp.abs(out - ref))}"
    print("KERNEL_OK")
</pallas_src>

<mosaic_0001>
module attributes {stable_mosaic.version = 11 : i64} {
  func.func @block_kernel(%arg0: memref<16x32xf32, #tpu.memory_space<vmem>>, %arg1: memref<168x256xf32, #tpu.memory_space<vmem>>, %arg2: memref<16x32xf32, #tpu.memory_space<vmem>>) attributes {dimension_semantics = [], scalar_prefetch = 0 : i64, scratch_operands = 0 : i64, tpu.core_type = #tpu.core_type<tc>} {
    %c0 = arith.constant 0 : index
    %c0_0 = arith.constant 0 : index
    %0 = vector.load %arg0[%c0, %c0_0] : memref<16x32xf32, #tpu.memory_space<vmem>>, vector<16x32xf32>
    %c0_1 = arith.constant 0 : index
    %c0_2 = arith.constant 0 : index
    %1 = vector.load %arg1[%c0_1, %c0_2] : memref<168x256xf32, #tpu.memory_space<vmem>>, vector<32x96xf32>
    %c0_3 = arith.constant 0 : index
    %c96 = arith.constant 96 : index
    %2 = vector.load %arg1[%c0_3, %c96] : memref<168x256xf32, #tpu.memory_space<vmem>>, vector<32x32xf32>
    %c0_4 = arith.constant 0 : index
    %c128 = arith.constant 128 : index
    %3 = vector.load %arg1[%c0_4, %c128] : memref<168x256xf32, #tpu.memory_space<vmem>>, vector<32x128xf32>
    %c32 = arith.constant 32 : index
    %c0_5 = arith.constant 0 : index
    %4 = vector.load %arg1[%c32, %c0_5] : memref<168x256xf32, #tpu.memory_space<vmem>>, vector<128x32xf32>
    %c160 = arith.constant 160 : index
    %c0_6 = arith.constant 0 : index
    %5 = vector.load %arg1[%c160, %c0_6] : memref<168x256xf32, #tpu.memory_space<vmem>>, vector<1x96xf32>
    %c160_7 = arith.constant 160 : index
    %c96_8 = arith.constant 96 : index
    %6 = vector.load %arg1[%c160_7, %c96_8] : memref<168x256xf32, #tpu.memory_space<vmem>>, vector<1x32xf32>
    %c160_9 = arith.constant 160 : index
    %c128_10 = arith.constant 128 : index
    %7 = vector.load %arg1[%c160_9, %c128_10] : memref<168x256xf32, #tpu.memory_space<vmem>>, vector<1x128xf32>
    %c161 = arith.constant 161 : index
    %c0_11 = arith.constant 0 : index
    %8 = vector.load %arg1[%c161, %c0_11] : memref<168x256xf32, #tpu.memory_space<vmem>>, vector<1x32xf32>
    %cst = arith.constant dense<0.000000e+00> : vector<16xf32>
    %9 = vector.multi_reduction <add>, %0, %cst [1] : vector<16x32xf32> to vector<16xf32>
    %10 = vector.shape_cast %9 : vector<16xf32> to vector<16x1xf32>
    %cst_12 = arith.constant 3.200000e+01 : f32
    %11 = vector.broadcast %cst_12 : f32 to vector<16x1xf32>
    %12 = arith.divf %10, %11 : vector<16x1xf32>
    %13 = vector.broadcast %12 : vector<16x1xf32> to vector<16x32xf32>
    %14 = arith.subf %0, %13 : vector<16x32xf32>
    %15 = vector.broadcast %12 : vector<16x1xf32> to vector<16x32xf32>
    %16 = arith.subf %0, %15 : vector<16x32xf32>
    %17 = arith.mulf %14, %16 : vector<16x32xf32>
    %cst_13 = arith.constant dense<0.000000e+00> : vector<16xf32>
    %18 = vector.multi_reduction <add>, %17, %cst_13 [1] : vector<16x32xf32> to vector<16xf32>
    %19 = vector.shape_cast %18 : vector<16xf32> to vector<16x1xf32>
    %cst_14 = arith.constant 3.200000e+01 : f32
    %20 = vector.broadcast %cst_14 : f32 to vector<16x1xf32>
    %21 = arith.divf %19, %20 : vector<16x1xf32>
    %22 = vector.broadcast %12 : vector<16x1xf32> to vector<16x32xf32>
    %23 = arith.subf %0, %22 : vector<16x32xf32>
    %cst_15 = arith.constant 9.99999974E-6 : f32
    %24 = vector.broadcast %cst_15 : f32 to vector<16x1xf32>
    %25 = arith.addf %21, %24 : vector<16x1xf32>
    %26 = math.rsqrt %25 : vector<16x1xf32>
    %27 = vector.broadcast %26 : vector<16x1xf32> to vector<16x32xf32>
    %28 = arith.mulf %23, %27 : vector<16x32xf32>
    %cst_16 = arith.constant dense<0.000000e+00> : vector<16x96xf32>
    %29 = tpu.matmul %28, %1, %cst_16 {dimension_numbers = #tpu.dot_dimension_numbers<[1], [0], [0], [1], [0, 0, 1, 1], [], []>} : vector<16x32xf32>, vector<32x96xf32>, vector<16x96xf32> -> vector<16x96xf32>
    %30 = vector.broadcast %5 : vector<1x96xf32> to vector<16x96xf32>
    %31 = arith.addf %29, %30 : vector<16x96xf32>
    %32 = tpu.iota {dimensions = array<i32: 0>} : vector<8x8xi32>
    %33 = tpu.iota {dimensions = array<i32: 1>} : vector<8x8xi32>
    %34 = arith.cmpi sge, %32, %33 : vector<8x8xi32>
    %35 = vector.shape_cast %34 : vector<8x8xi1> to vector<1x8x8xi1>
    %36 = vector.extract_strided_slice %31 {offsets = [0, 0], sizes = [8, 96], strides = [1, 1]} : vector<16x96xf32> to vector<8x96xf32>
    %37 = vector.extract_strided_slice %36 {offsets = [0, 0], sizes = [8, 32], strides = [1, 1]} : vector<8x96xf32> to vector<8x32xf32>
    %38 = vector.shape_cast %37 : vector<8x32xf32> to vector<8x4x8xf32>
    %39 = vector.extract_strided_slice %36 {offsets = [0, 32], sizes = [8, 32], strides = [1, 1]} : vector<8x96xf32> to vector<8x32xf32>
    %40 = vector.shape_cast %39 : vector<8x32xf32> to vector<8x4x8xf32>
    %41 = vector.extract_strided_slice %36 {offsets = [0, 64], sizes = [8, 32], strides = [1, 1]} : vector<8x96xf32> to vector<8x32xf32>
    %42 = vector.shape_cast %41 : vector<8x32xf32> to vector<8x4x8xf32>
    "tpu.trace_start"() <{level = 10 : i32, message = "thd,shd->hts"}> : () -> ()
    %cst_17 = arith.constant dense<0.000000e+00> : vector<4x8x8xf32>
    %43 = tpu.matmul %38, %40, %cst_17 {dimension_numbers = #tpu.dot_dimension_numbers<[2], [2], [0], [0], [0, 1, 0, 0, 1, 0], [1], [1]>} : vector<8x4x8xf32>, vector<8x4x8xf32>, vector<4x8x8xf32> -> vector<4x8x8xf32>
    %cst_18 = arith.constant -1.000000e+30 : f32
    "tpu.trace_stop"() : () -> ()
    %44 = vector.shape_cast %35 : vector<1x8x8xi1> to vector<1x8x8xi1>
    %45 = vector.broadcast %44 : vector<1x8x8xi1> to vector<4x8x8xi1>
    %46 = vector.broadcast %cst_18 : f32 to vector<4x8x8xf32>
    %47 = arith.select %45, %43, %46 : vector<4x8x8xi1>, vector<4x8x8xf32>
    %cst_19 = arith.constant dense<0xFF800000> : vector<4x8xf32>
    %48 = vector.multi_reduction <maximumf>, %47, %cst_19 [2] : vector<4x8x8xf32> to vector<4x8xf32>
    %49 = vector.shape_cast %48 : vector<4x8xf32> to vector<4x8x1xf32>
    %50 = vector.broadcast %49 : vector<4x8x1xf32> to vector<4x8x8xf32>
    %51 = arith.subf %47, %50 : vector<4x8x8xf32>
    %52 = math.exp %51 : vector<4x8x8xf32>
    %cst_20 = arith.constant dense<0.000000e+00> : vector<4x8xf32>
    %53 = vector.multi_reduction <add>, %52, %cst_20 [2] : vector<4x8x8xf32> to vector<4x8xf32>
    %54 = vector.shape_cast %53 : vector<4x8xf32> to vector<4x8x1xf32>
    %55 = tpu.reciprocal %54 {approx = true} : vector<4x8x1xf32> -> vector<4x8x1xf32>
    %56 = vector.broadcast %55 : vector<4x8x1xf32> to vector<4x8x8xf32>
    %57 = arith.mulf %52, %56 : vector<4x8x8xf32>
    "tpu.trace_start"() <{level = 10 : i32, message = "hts,shd->thd"}> : () -> ()
    %cst_21 = arith.constant dense<0.000000e+00> : vector<4x8x8xf32>
    %58 = tpu.matmul %42, %57, %cst_21 {dimension_numbers = #tpu.dot_dimension_numbers<[0], [2], [2], [1], [0, 1, 0, 2, 1, 1], [1], [0]>} : vector<8x4x8xf32>, vector<4x8x8xf32>, vector<4x8x8xf32> -> vector<4x8x8xf32>
    %59 = tpu.transpose %58, [2, 0, 1] : vector<4x8x8xf32> -> vector<8x4x8xf32>
    "tpu.trace_stop"() : () -> ()
    %60 = vector.shape_cast %59 : vector<8x4x8xf32> to vector<8x32xf32>
    %61 = vector.extract_strided_slice %31 {offsets = [8, 0], sizes = [8, 96], strides = [1, 1]} : vector<16x96xf32> to vector<8x96xf32>
    %62 = vector.extract_strided_slice %61 {offsets = [0, 0], sizes = [8, 32], strides = [1, 1]} : vector<8x96xf32> to vector<8x32xf32>
    %63 = vector.shape_cast %62 : vector<8x32xf32> to vector<8x4x8xf32>
    %64 = vector.extract_strided_slice %61 {offsets = [0, 32], sizes = [8, 32], strides = [1, 1]} : vector<8x96xf32> to vector<8x32xf32>
    %65 = vector.shape_cast %64 : vector<8x32xf32> to vector<8x4x8xf32>
    %66 = vector.extract_strided_slice %61 {offsets = [0, 64], sizes = [8, 32], strides = [1, 1]} : vector<8x96xf32> to vector<8x32xf32>
    %67 = vector.shape_cast %66 : vector<8x32xf32> to vector<8x4x8xf32>
    "tpu.trace_start"() <{level = 10 : i32, message = "thd,shd->hts"}> : () -> ()
    %cst_22 = arith.constant dense<0.000000e+00> : vector<4x8x8xf32>
    %68 = tpu.matmul %63, %65, %cst_22 {dimension_numbers = #tpu.dot_dimension_numbers<[2], [2], [0], [0], [0, 1, 0, 0, 1, 0], [1], [1]>} : vector<8x4x8xf32>, vector<8x4x8xf32>, vector<4x8x8xf32> -> vector<4x8x8xf32>
    %cst_23 = arith.constant -1.000000e+30 : f32
    "tpu.trace_stop"() : () -> ()
    %69 = vector.shape_cast %35 : vector<1x8x8xi1> to vector<1x8x8xi1>
    %70 = vector.broadcast %69 : vector<1x8x8xi1> to vector<4x8x8xi1>
    %71 = vector.broadcast %cst_23 : f32 to vector<4x8x8xf32>
    %72 = arith.select %70, %68, %71 : vector<4x8x8xi1>, vector<4x8x8xf32>
    %cst_24 = arith.constant dense<0xFF800000> : vector<4x8xf32>
    %73 = vector.multi_reduction <maximumf>, %72, %cst_24 [2] : vector<4x8x8xf32> to vector<4x8xf32>
    %74 = vector.shape_cast %73 : vector<4x8xf32> to vector<4x8x1xf32>
    %75 = vector.broadcast %74 : vector<4x8x1xf32> to vector<4x8x8xf32>
    %76 = arith.subf %72, %75 : vector<4x8x8xf32>
    %77 = math.exp %76 : vector<4x8x8xf32>
    %cst_25 = arith.constant dense<0.000000e+00> : vector<4x8xf32>
    %78 = vector.multi_reduction <add>, %77, %cst_25 [2] : vector<4x8x8xf32> to vector<4x8xf32>
    %79 = vector.shape_cast %78 : vector<4x8xf32> to vector<4x8x1xf32>
    %80 = tpu.reciprocal %79 {approx = true} : vector<4x8x1xf32> -> vector<4x8x1xf32>
    %81 = vector.broadcast %80 : vector<4x8x1xf32> to vector<4x8x8xf32>
    %82 = arith.mulf %77, %81 : vector<4x8x8xf32>
    "tpu.trace_start"() <{level = 10 : i32, message = "hts,shd->thd"}> : () -> ()
    %cst_26 = arith.constant dense<0.000000e+00> : vector<4x8x8xf32>
    %83 = tpu.matmul %67, %82, %cst_26 {dimension_numbers = #tpu.dot_dimension_numbers<[0], [2], [2], [1], [0, 1, 0, 2, 1, 1], [1], [0]>} : vector<8x4x8xf32>, vector<4x8x8xf32>, vector<4x8x8xf32> -> vector<4x8x8xf32>
    %84 = tpu.transpose %83, [2, 0, 1] : vector<4x8x8xf32> -> vector<8x4x8xf32>
    "tpu.trace_stop"() : () -> ()
    %85 = vector.shape_cast %84 : vector<8x4x8xf32> to vector<8x32xf32>
    %86 = tpu.concatenate %60, %85 in 0 : vector<8x32xf32>, vector<8x32xf32> -> vector<16x32xf32>
    %cst_27 = arith.constant dense<0.000000e+00> : vector<16x32xf32>
    %87 = tpu.matmul %86, %2, %cst_27 {dimension_numbers = #tpu.dot_dimension_numbers<[1], [0], [0], [1], [0, 0, 1, 1], [], []>} : vector<16x32xf32>, vector<32x32xf32>, vector<16x32xf32> -> vector<16x32xf32>
    %88 = arith.addf %0, %87 : vector<16x32xf32>
    %89 = vector.broadcast %6 : vector<1x32xf32> to vector<16x32xf32>
    %90 = arith.addf %88, %89 : vector<16x32xf32>
    %cst_28 = arith.constant dense<0.000000e+00> : vector<16xf32>
    %91 = vector.multi_reduction <add>, %90, %cst_28 [1] : vector<16x32xf32> to vector<16xf32>
    %92 = vector.shape_cast %91 : vector<16xf32> to vector<16x1xf32>
    %cst_29 = arith.constant 3.200000e+01 : f32
    %93 = vector.broadcast %cst_29 : f32 to vector<16x1xf32>
    %94 = arith.divf %92, %93 : vector<16x1xf32>
    %95 = vector.broadcast %94 : vector<16x1xf32> to vector<16x32xf32>
    %96 = arith.subf %90, %95 : vector<16x32xf32>
    %97 = vector.broadcast %94 : vector<16x1xf32> to vector<16x32xf32>
    %98 = arith.subf %90, %97 : vector<16x32xf32>
    %99 = arith.mulf %96, %98 : vector<16x32xf32>
    %cst_30 = arith.constant dense<0.000000e+00> : vector<16xf32>
    %100 = vector.multi_reduction <add>, %99, %cst_30 [1] : vector<16x32xf32> to vector<16xf32>
    %101 = vector.shape_cast %100 : vector<16xf32> to vector<16x1xf32>
    %cst_31 = arith.constant 3.200000e+01 : f32
    %102 = vector.broadcast %cst_31 : f32 to vector<16x1xf32>
    %103 = arith.divf %101, %102 : vector<16x1xf32>
    %104 = vector.broadcast %94 : vector<16x1xf32> to vector<16x32xf32>
    %105 = arith.subf %90, %104 : vector<16x32xf32>
    %cst_32 = arith.constant 9.99999974E-6 : f32
    %106 = vector.broadcast %cst_32 : f32 to vector<16x1xf32>
    %107 = arith.addf %103, %106 : vector<16x1xf32>
    %108 = math.rsqrt %107 : vector<16x1xf32>
    %109 = vector.broadcast %108 : vector<16x1xf32> to vector<16x32xf32>
    %110 = arith.mulf %105, %109 : vector<16x32xf32>
    %cst_33 = arith.constant dense<0.000000e+00> : vector<16x128xf32>
    %111 = tpu.matmul %110, %3, %cst_33 {dimension_numbers = #tpu.dot_dimension_numbers<[1], [0], [0], [1], [0, 0, 1, 1], [], []>} : vector<16x32xf32>, vector<32x128xf32>, vector<16x128xf32> -> vector<16x128xf32>
    %112 = vector.broadcast %7 : vector<1x128xf32> to vector<16x128xf32>
    %113 = arith.addf %111, %112 : vector<16x128xf32>
    %cst_34 = arith.constant 5.000000e-01 : f32
    %114 = vector.broadcast %cst_34 : f32 to vector<16x128xf32>
    %115 = arith.mulf %114, %113 : vector<16x128xf32>
    %cst_35 = arith.constant 4.471500e-02 : f32
    %116 = vector.broadcast %cst_35 : f32 to vector<16x128xf32>
    %117 = arith.mulf %116, %113 : vector<16x128xf32>
    %118 = arith.mulf %117, %113 : vector<16x128xf32>
    %119 = arith.mulf %118, %113 : vector<16x128xf32>
    %120 = arith.addf %113, %119 : vector<16x128xf32>
    %cst_36 = arith.constant 0.797884583 : f32
    %121 = vector.broadcast %cst_36 : f32 to vector<16x128xf32>
    %122 = arith.mulf %121, %120 : vector<16x128xf32>
    %123 = math.tanh %122 : vector<16x128xf32>
    %cst_37 = arith.constant 1.000000e+00 : f32
    %124 = vector.broadcast %cst_37 : f32 to vector<16x128xf32>
    %125 = arith.addf %124, %123 : vector<16x128xf32>
    %126 = arith.mulf %115, %125 : vector<16x128xf32>
    %cst_38 = arith.constant dense<0.000000e+00> : vector<16x32xf32>
    %127 = tpu.matmul %126, %4, %cst_38 {dimension_numbers = #tpu.dot_dimension_numbers<[1], [0], [0], [1], [0, 0, 1, 1], [], []>} : vector<16x128xf32>, vector<128x32xf32>, vector<16x32xf32> -> vector<16x32xf32>
    %128 = arith.addf %90, %127 : vector<16x32xf32>
    %129 = vector.broadcast %8 : vector<1x32xf32> to vector<16x32xf32>
    %130 = arith.addf %128, %129 : vector<16x32xf32>
    %c0_39 = arith.constant 0 : index
    %c0_40 = arith.constant 0 : index
    %131 = vector.load %arg2[%c0_39, %c0_40] : memref<16x32xf32, #tpu.memory_space<vmem>>, vector<16x32xf32>
    tpu.vector_store %arg2[%c0_39, %c0_40], %130 {strides = array<i32>} : memref<16x32xf32, #tpu.memory_space<vmem>>, vector<16x32xf32>,
    return
  }
}

</mosaic_0001>

<bundles_post_ra>
// kernel: tpu_custom_call.1
= control target key start
LH: loop header
LB: loop body
LE: loop exit
PB: predicated region body
PF: predicated region fallthrough
CT: control target
= control target key end

     0   :  { %7 = vsyncpa [#allocation3], 0  ;;  %s3766_s0 = inlined_call_operand.hbm [shape: f32[16,32], index: 0, kind: input, shape index: {}]   ;;  %s3767_s1 = inlined_call_operand.hbm [shape: f32[168,256], index: 1, kind: input, shape index: {}]   ;;  %s3768_s2 = inlined_call_operand.hbm [shape: f32[16,32], index: 2, kind: output, shape index: {}]  }
   0x1   :  { %8 = vsyncpa [#allocation6], 0 }
   0x2   :  { %9 = vsyncpa [#allocation4], 0  ;;  %s3379_s9 = smov [#allocation2]   ;;  %s3307_s13 = scalar_lea.hbm %s3766_s0, 256 }
   0x3   :  { %s15_s10 = sshll.u32 %s3379_s9, 4  ;;  %p3308_p0 = scmp.ne.s32.totalorder %s3766_s0, %s3307_s13  ;;  %s16_s10 = int_to_ptr.vmem [resolvable:$true] %s15_s10 }
   0x4   :  { %p3311_p1 = scmp.lt.u32.totalorder %s3307_s13, %s3766_s0 }
   0x6   :  { %p3313_p2 = pnand %p3311_p1, %p3308_p0 }
   0x8   :  { %3316 = shalt.err (!%p3313_p2)
}
   0x9   :  { %s3317_s18 = scalar_lea.vmem %s16_s10, 256  ;;  %p3322_p4 = scmp.lt.s32.totalorder %s16_s10, %s16_s10 }
   0xa   :  { %p3318_p3 = scmp.ne.s32.totalorder %s16_s10, %s3317_s18  ;;  %p3323_p5 = scmp.lt.s32.totalorder %s3317_s18, %s3317_s18 }
   0xc   :  { %p3324_p6 = por %p3323_p5, %p3322_p4 }
   0xe   :  { %p3325_p7 = pnand %p3324_p6, %p3318_p3 }
  0x10   :  { %3328 = shalt.err (!%p3325_p7)
}
  0x11   :  { %s3380_s19 = smov 128   ;;  %s3381_s20 = smov 8  }
  0x12   :  { %21 = dma.hbm_to_vmem [thread:$0]  %s3766_s0, 256, %s16_s10, [#allocation3], %s3380_s19, %s3380_s19, %s3381_s20  }
  0x13   :  { %s3382_s23 = smov [#allocation5]   ;;  %s3329_s27 = scalar_lea.hbm %s3767_s1, 5376 }
  0x14   :  { %s27_s24 = sshll.u32 %s3382_s23, 4  ;;  %p3330_p8 = scmp.ne.s32.totalorder %s3767_s1, %s3329_s27  ;;  %s28_s24 = int_to_ptr.vmem [resolvable:$true] %s27_s24 }
  0x15   :  { %p3333_p9 = scmp.lt.u32.totalorder %s3329_s27, %s3767_s1 }
  0x17   :  { %p3335_p10 = pnand %p3333_p9, %p3330_p8 }
  0x19   :  { %3338 = shalt.err (!%p3335_p10)
}
  0x1a   :  { %s3339_s4 = scalar_lea.vmem %s28_s24, 5376  ;;  %p3344_p12 = scmp.lt.s32.totalorder %s28_s24, %s28_s24 }
  0x1b   :  { %p3340_p11 = scmp.ne.s32.totalorder %s28_s24, %s3339_s4  ;;  %p3345_p13 = scmp.lt.s32.totalorder %s3339_s4, %s3339_s4 }
  0x1d   :  { %p3346_p0 = por %p3345_p13, %p3344_p12 }
  0x1f   :  { %p3347_p1 = pnand %p3346_p0, %p3340_p11 }
  0x21   :  { %3350 = shalt.err (!%p3347_p1)
}
  0x22   :  { %s3383_s0 = smov 256   ;;  %s3384_s5 = smov 16  }
  0x23   :  { %33 = dma.hbm_to_vmem [thread:$0]  %s3767_s1, 5376, %s28_s24, [#allocation6], %s3383_s0, %s3383_s0, %s3384_s5  }
  0x24   :  { %3373 = dma.done.wait [#allocation3], 256  }
  0x25   :  { %3374 = vsyncadd [#allocation3], 4294967040 }
  0x26   :  { %3375 = dma.done.wait [#allocation6], 5376  }
  0x27   :  { %3376 = vsyncadd [#allocation6], 4294961920  ;;  %vm69_vm0 = vcmask 261120   ;;  %v3440_v0 = vld [vmem:[#allocation2] sm:$0xff]  ;;  %v3442_v1 = vld [vmem:[#allocation2 + $0x8] sm:$0xff]  ;;  %s3385_s1 = smov 112   ;;  %v178_v48 = vlaneseq }
  0x28   :  { %v70_v2 = vsel %vm69_vm0, %v3440_v0, 0.0  ;;  %v73_v3 = vsel %vm69_vm0, %v3442_v1, 0.0  ;;  %v3452_v14 = vld [vmem:[#allocation5] sm:$0xff]  ;;  %v3454_v15 = vld [vmem:[#allocation5 + $0x10] sm:$0xff]  ;;  %s3386_s8 = smov 120   ;;  %s3387_s9 = smov 104  }
  0x29   :  { %71 = vadd.xlane.f32.xlu0 %v70_v2  ;;  %v3456_v16 = vld [vmem:[#allocation5 + $0x20] sm:$0xff]  ;;  %v3253_v17 = vpack.i.bf16 %v3454_v15, %v3452_v14  ;;  %v3179_v18 = vpack.c.bf16 %v3454_v15, %v3452_v14  ;;  %v3462_v19 = vld [vmem:[#allocation5 + $0x30] sm:$0xff]  ;;  %s3388_s10 = smov 96   ;;  %v3389_v38 = vmov 0.0   ;;  %vm3390_vm1 = vmmov 0   ;;  %s3391_s11 = smov 64  }
  0x2a   :  { %v3183_v20 = vpack.c.bf16 %v3462_v19, %v3456_v16  ;;  %v3468_v31 = vld [vmem:[#allocation5 + $0x140] ss:$0 sm:$0xff]  ;;  %3052 = vmatprep.subr.mxu1 %v3389_v38  ;;  %3054 = vmatprep.mubr.msk.f32.mxu1 %vm3390_vm1, %v3389_v38  ;;  %vm330_vm2 = vcmask 64512   ;;  %v3522_v49 = vshrl.u32 %v178_v48, 7  ;;  %v181_v50 = vand.u32 127, %v178_v48  ;;  %s3394_s12 = smov 32  }
  0x2b   :  { %3180 = vmatprep.subr.bf16.mxu0 %v3179_v18  ;;  %s3395_s13 = smov 24   ;;  %vm1390_vm4 = vcmask 130048   ;;  %vm1392_vm5 = vcmask 195584   ;;  %s3396_s14 = smov [#allocation7]  }
  0x2c   :  { %3182 = vmatpush3.bf16.msra.mxu0 %v3179_v18  ;;  %vm3525_vm3 = vcmp.ge.s32.totalorder %v3522_v49, %v181_v50  ;;  %s2916_s15 = sshll.u32 %s3396_s14, 4  ;;  %s2917_s15 = int_to_ptr.vmem [resolvable:$true] %s2916_s15 }
  0x2d   :  { %74 = vadd.xlane.f32.xlu0 %v73_v3  ;;  %3184 = vmatprep.subr.bf16.mxu0 %v3183_v20  ;;  %s3351_s16 = scalar_lea.vmem %s2917_s15, 256  ;;  %p3356_p3 = scmp.lt.s32.totalorder %s2917_s15, %s2917_s15 }
  0x2e   :  { %p3352_p2 = scmp.ne.s32.totalorder %s2917_s15, %s3351_s16  ;;  %p3357_p4 = scmp.lt.s32.totalorder %s3351_s16, %s3351_s16 }
  0x30   :  { %3186 = vmatpush3.bf16.msra.mxu0 %v3183_v20  ;;  %p3358_p5 = por %p3357_p4, %p3356_p3 }
  0x31   :  { %3042 = vmatprep.subr.mxu0 %v3389_v38 }
  0x32   :  { %p3359_p6 = pnand %p3358_p5, %p3352_p2 }
  0xb6   :  { %v72_v4 = vpop.xlane.xlu0 %71 }
  0xb7   :  { %v77_v5 = vmul.f32 0.03125, %v72_v4 }
  0xb9   :  { %v79_v6 = vsub.f32 %v3440_v0, %v77_v5 }
  0xba   :  { %v75_v7 = vpop.xlane.xlu0 %74 }
  0xbb   :  { %v78_v8 = vmul.f32 0.03125, %v75_v7  ;;  %v81_v9 = vmul.f32 %v79_v6, %v79_v6 }
  0xbd   :  { %v80_v10 = vsub.f32 %v3442_v1, %v78_v8  ;;  %v83_v11 = vsel %vm69_vm0, %v81_v9, 0.0 }
  0xbe   :  { %84 = vadd.xlane.f32.xlu1 %v83_v11 }
  0xbf   :  { %v82_v12 = vmul.f32 %v80_v10, %v80_v10 }
  0xc1   :  { %v86_v13 = vsel %vm69_vm0, %v82_v12, 0.0 }
  0xc2   :  { %87 = vadd.xlane.f32.xlu1 %v86_v13 }
 0x14b   :  { %v85_v21 = vpop.xlane.xlu1 %84 }
 0x14c   :  { %v89_v22 = vmul.f32 0.03125, %v85_v21 }
 0x14e   :  { %v91_v23 = vadd.f32 1e-05, %v89_v22 }
 0x14f   :  { %v88_v24 = vpop.xlane.xlu1 %87 }
 0x150   :  { %3263 = vrsqrt.f32 %v91_v23  ;;  %v90_v25 = vmul.f32 0.03125, %v88_v24 }
 0x152   :  { %v92_v26 = vadd.f32 1e-05, %v90_v25 }
 0x154   :  { %3265 = vrsqrt.f32 %v92_v26 }
 0x15a   :  { %v3264_v27 = vpop.eup %3263 }
 0x15b   :  { %v95_v28 = vmul.f32 %v3264_v27, %v79_v6 }
 0x15d   :  { %3039 = vmatprep.mubr.msk.f32.mxu0 %vm69_vm0, %v95_v28 }
 0x15e   :  { %v3266_v29 = vpop.eup %3265 }
 0x15f   :  { %v96_v30 = vmul.f32 %v3266_v29, %v80_v10 }
 0x161   :  { %3040 = vmatmul.mubr.msk.f32.vlgmr.msra.gmra.mrb[0].mxu0 %vm69_vm0, %v96_v30 }
 0x162   :  { %3044 = vmatprep.mubr.msk.f32.mxu0 %vm3390_vm1, %v3389_v38 }
 0x234   :  { %v3041_v32 = vpop.f32.mrb[0].mxu0 }
 0x235   :  { %v169_v33 = vpop.f32.mrb[1].mxu0  ;;  %v3498_v40 = vadd.f32 %v3041_v32, %v3468_v31 }
 0x236   :  { %v3471_v34 = vadd.f32 %v169_v33, %v3468_v31 }
 0x238   :  { %186 = vrot.lane.b32.xlu1 %v3471_v34, %s3385_s1  ;;  %184 = vrot.lane.b32.xlu0 %v3471_v34, %s3386_s8 }
 0x23c   :  { %188 = vrot.lane.b32.xlu1 %v3471_v34, %s3387_s9 }
 0x240   :  { %190 = vrot.lane.b32.xlu1 %v3471_v34, %s3388_s10 }
 0x2aa   :  { %v3479_v35 = vpop.permute.xlu1 %186  ;;  %v3481_v36 = vpop.permute.xlu0 %184 }
 0x2ab   :  { %194 = vrot.lane.b32.xlu1 %v3479_v35, %s3388_s10  ;;  %192 = vrot.lane.b32.xlu0 %v3481_v36, %s3388_s10 }
 0x2ae   :  { %v3487_v37 = vpop.permute.xlu1 %188 }
 0x2af   :  { %196 = vrot.lane.b32.xlu0 %v3487_v37, %s3388_s10 }
 0x2b2   :  { %v191_v39 = vpop.permute.xlu1 %190 }
 0x2d4   :  { %202 = vxpose.xlu1.b32.start.end [1/1] (short) (narrow) %v191_v39, 8 }
 0x2f2   :  { %1395 = vrot.lane.b32.xlu1 %v3498_v40, %s3386_s8 }
 0x31d   :  { %v193_v41 = vpop.permute.xlu0 %192  ;;  %v195_v42 = vpop.permute.xlu1 %194 }
 0x31e   :  { %234 = vxpose.xlu0.b32.start.end [1/1] (short) (narrow) %v193_v41, 8 }
 0x321   :  { %v197_v43 = vpop.permute.xlu0 %196 }
 0x322   :  { %266 = vxpose.xlu0.b32.start.end [1/1] (short) (narrow) %v195_v42, 8 }
 0x326   :  { %298 = vxpose.xlu0.b32.start.end [1/1] (short) (narrow) %v197_v43, 8 }
 0x34f   :  { %1397 = vrot.lane.b32.xlu0 %v3498_v40, %s3385_s1 }
 0x354   :  { %v218_v44 = vpop.trf.xlu1 }
 0x355   :  { %3043 = vmatpush3.msra.mxu0 %v218_v44 }
 0x356   :  { %3045 = vmatmul.mubr.msk.f32.vlgmr.msra.gmra.mrb[2].mxu0 %vm330_vm2, %v3471_v34  ;;  %3047 = vmatprep.subr.mxu0 %v3389_v38 }
 0x357   :  { %3049 = vmatprep.mubr.msk.f32.mxu0 %vm3390_vm1, %v3389_v38 }
 0x364   :  { %v3549_v6 = vpop.permute.xlu1 %1395 }
 0x39e   :  { %v250_v45 = vpop.trf.xlu0 }
 0x39f   :  { %3048 = vmatpush3.msra.mxu0 %v250_v45 }
 0x3a0   :  { %3050 = vmatmul.mubr.msk.f32.vlgmr.msra.gmra.mrb[4].mxu0 %vm330_vm2, %v3481_v36  ;;  %3057 = vmatprep.subr.mxu0 %v3389_v38 }
 0x3a1   :  { %3059 = vmatprep.mubr.msk.f32.mxu0 %vm3390_vm1, %v3389_v38 }
 0x3a2   :  { %v282_v46 = vpop.trf.xlu0 }
 0x3a3   :  { %3053 = vmatpush3.msra.mxu1 %v282_v46 }
 0x3a4   :  { %3055 = vmatmul.mubr.msk.f32.vlgmr.msra.gmra.mrb[0].mxu1 %vm330_vm2, %v3479_v35  ;;  %3062 = vmatprep.subr.mxu1 %v3389_v38 }
 0x3a5   :  { %3064 = vmatprep.mubr.msk.f32.mxu1 %vm3390_vm1, %v3389_v38 }
 0x3a6   :  { %v314_v47 = vpop.trf.xlu0 }
 0x3a7   :  { %3058 = vmatpush3.msra.mxu0 %v314_v47 }
 0x3a8   :  { %3060 = vmatmul.mubr.msk.f32.vlgmr.msra.gmra.mrb[6].mxu0 %vm330_vm2, %v3487_v37  ;;  %3067 = vmatprep.subr.mxu0 %v3389_v38 }
 0x3a9   :  { %3069 = vmatprep.mubr.msk.f32.mxu0 %vm3390_vm1, %v3389_v38 }
 0x3c1   :  { %v3557_v11 = vpop.permute.xlu0 %1397 }
 0x429   :  { %v399_v52 = vpop.f32.mrb[2].mxu0 }
 0x42a   :  { %v621_v53 = vsel %vm3525_vm3, %v399_v52, -1e+30  ;;  %v3046_v54 = vpop.f32.mrb[3].mxu0 }
 0x42b   :  { %v625_v55 = vsel %vm330_vm2, %v621_v53, -inf }
 0x42c   :  { %626 = vmax.xlane.f32.xlu0 %v625_v55 }
 0x473   :  { %v471_v56 = vpop.f32.mrb[4].mxu0 }
 0x474   :  { %v622_v57 = vsel %vm3525_vm3, %v471_v56, -1e+30  ;;  %v3051_v58 = vpop.f32.mrb[5].mxu0 }
 0x475   :  { %v628_v59 = vsel %vm330_vm2, %v622_v57, -inf }
 0x476   :  { %629 = vmax.xlane.f32.xlu1 %v628_v59 }
 0x477   :  { %v543_v60 = vpop.f32.mrb[0].mxu1 }
 0x478   :  { %v623_v61 = vsel %vm3525_vm3, %v543_v60, -1e+30  ;;  %v3056_v62 = vpop.f32.mrb[1].mxu1 }
 0x479   :  { %v631_v63 = vsel %vm330_vm2, %v623_v61, -inf }
 0x47a   :  { %632 = vmax.xlane.f32.xlu1 %v631_v63 }
 0x47b   :  { %v615_v2 = vpop.f32.mrb[6].mxu0 }
 0x47c   :  { %v624_v3 = vsel %vm3525_vm3, %v615_v2, -1e+30  ;;  %v3061_v4 = vpop.f32.mrb[7].mxu0 }
 0x47d   :  { %v634_v5 = vsel %vm330_vm2, %v624_v3, -inf }
 0x47e   :  { %635 = vmax.xlane.f32.xlu0 %v634_v5 }
 0x48b   :  { %1399 = vrot.lane.b32.xlu1 %v3498_v40, %s3387_s9 }
 0x48f   :  { %669 = vrot.lane.b32.xlu1 %v3471_v34, %s3391_s11 }
 0x493   :  { %671 = vrot.lane.b32.xlu1 %v3481_v36, %s3391_s11 }
 0x497   :  { %675 = vrot.lane.b32.xlu1 %v3487_v37, %s3391_s11 }
 0x49b   :  { %1403 = vrot.lane.b32.xlu1 %v3549_v6, %s3388_s10 }
 0x4b9   :  { %v627_v12 = vpop.xlane.xlu0 %626 }
 0x4ba   :  { %v637_v27 = vsub.f32 %v621_v53, %v627_v12 }
 0x4bc   :  { %v641_v28 = vmul.f32 1.442695, %v637_v27 }
 0x503   :  { %v630_v7 = vpop.xlane.xlu1 %629 }
 0x504   :  { %v638_v13 = vsub.f32 %v622_v57, %v630_v7 }
 0x506   :  { %v643_v20 = vmul.f32 1.442695, %v638_v13 }
 0x507   :  { %v633_v8 = vpop.xlane.xlu1 %632 }
 0x508   :  { %3267 = vpow2.f32 %v643_v20  ;;  %v639_v29 = vsub.f32 %v623_v61, %v633_v8 }
 0x50a   :  { %v645_v30 = vmul.f32 1.442695, %v639_v29 }
 0x50b   :  { %v3553_v9 = vpop.permute.xlu1 %1399  ;;  %v636_v18 = vpop.xlane.xlu0 %635 }
 0x50c   :  { %1407 = vrot.lane.b32.xlu1 %v3553_v9, %s3388_s10  ;;  %v640_v21 = vsub.f32 %v624_v3, %v636_v18 }
 0x50e   :  { %v647_v22 = vmul.f32 1.442695, %v640_v21 }
 0x50f   :  { %v670_v10 = vpop.permute.xlu1 %669 }
 0x510   :  { %681 = vxpose.xlu0.b32.start.end [1/1] (short) (narrow) %v670_v10, 8  ;;  %3269 = vpow2.f32 %v647_v22 }
 0x511   :  { %3271 = vpow2.f32 %v641_v28 }
 0x512   :  { %v3268_v23 = vpop.eup %3267  ;;  %3273 = vpow2.f32 %v645_v30 }
 0x513   :  { %v652_v24 = vsel %vm330_vm2, %v3268_v23, 0.0 }
 0x51a   :  { %v3270_v25 = vpop.eup %3269 }
 0x51b   :  { %v658_v26 = vsel %vm330_vm2, %v3270_v25, 0.0  ;;  %v3272_v32 = vpop.eup %3271 }
 0x51c   :  { %v649_v33 = vsel %vm330_vm2, %v3272_v32, 0.0  ;;  %v3274_v34 = vpop.eup %3273 }
 0x51d   :  { %v655_v36 = vsel %vm330_vm2, %v3274_v34, 0.0 }
 0x530   :  { %653 = vadd.xlane.f32.xlu1 %v652_v24 }
 0x534   :  { %659 = vadd.xlane.f32.xlu1 %v658_v26 }
 0x539   :  { %673 = vrot.lane.b32.xlu0 %v3479_v35, %s3391_s11  ;;  %v672_v35 = vpop.permute.xlu1 %671 }
 0x53d   :  { %1401 = vrot.lane.b32.xlu0 %v3498_v40, %s3388_s10  ;;  %v676_v41 = vpop.permute.xlu1 %675 }
 0x541   :  { %1405 = vrot.lane.b32.xlu0 %v3557_v11, %s3388_s10  ;;  %v1404_v44 = vpop.permute.xlu1 %1403 }
 0x560   :  { %650 = vadd.xlane.f32.xlu0 %v649_v33 }
 0x564   :  { %656 = vadd.xlane.f32.xlu0 %v655_v36 }
 0x567   :  { %713 = vxpose.xlu1.b32.start.end [1/1] (short) (narrow) %v672_v35, 8 }
 0x57e   :  { %v1408_v45 = vpop.permute.xlu1 %1407 }
 0x590   :  { %v697_v37 = vpop.trf.xlu0 }
 0x5ab   :  { %v674_v39 = vpop.permute.xlu0 %673 }
 0x5ac   :  { %745 = vxpose.xlu0.b32.start.end [1/1] (short) (narrow) %v674_v39, 8 }
 0x5af   :  { %v1402_v42 = vpop.permute.xlu0 %1401 }
 0x5b0   :  { %777 = vxpose.xlu0.b32.start.end [1/1] (short) (narrow) %v676_v41, 8 }
 0x5b3   :  { %v1406_v43 = vpop.permute.xlu0 %1405 }
 0x5b4   :  { %1413 = vxpose.xlu0.b32.start.end [1/1] (short) (narrow) %v1402_v42, 8  ;;  %1477 = vxpose.xlu1.b32.start.end [1/1] (short) (narrow) %v1406_v43, 8 }
 0x5b8   :  { %1445 = vxpose.xlu0.b32.start.end [1/1] (short) (narrow) %v1404_v44, 8 }
 0x5bc   :  { %1509 = vxpose.xlu0.b32.start.end [1/1] (short) (narrow) %v1408_v45, 8 }
 0x5bd   :  { %v654_v46 = vpop.xlane.xlu1 %653 }
 0x5be   :  { %3275 = vrcp.f32 %v654_v46 }
 0x5c1   :  { %v660_v50 = vpop.xlane.xlu1 %659 }
 0x5c2   :  { %3277 = vrcp.f32 %v660_v50 }
 0x5c8   :  { %v3276_v47 = vpop.eup %3275 }
 0x5c9   :  { %v666_v48 = vmul.f32 %v3276_v47, %v3268_v23 }
 0x5cb   :  { %3068 = vmatpush3.xpose.msk.msra.mxu0 %vm330_vm2, %v666_v48 }
 0x5cc   :  { %3077 = vmatprep.subr.mxu0 %v3389_v38  ;;  %v3278_v52 = vpop.eup %3277 }
 0x5cd   :  { %v668_v53 = vmul.f32 %v3278_v52, %v3270_v25 }
 0x5e7   :  { %v729_v54 = vpop.trf.xlu1 }
 0x5e8   :  { %3070 = vmatmul.mubr.msk.f32.vlgmr.msra.gmra.mrb[8].mxu0 %vm330_vm2, %v729_v54 }
 0x5e9   :  { %3078 = vmatpush3.xpose.msk.msra.mxu0 %vm330_vm2, %v668_v53  ;;  %3079 = vmatprep.mubr.msk.f32.mxu0 %vm3390_vm1, %v3389_v38 }
 0x5ea   :  { %3087 = vmatprep.subr.mxu0 %v3389_v38 }
 0x5ed   :  { %v651_v55 = vpop.xlane.xlu0 %650 }
 0x5ee   :  { %3279 = vrcp.f32 %v651_v55 }
 0x5f1   :  { %v657_v56 = vpop.xlane.xlu0 %656 }
 0x5f2   :  { %3281 = vrcp.f32 %v657_v56 }
 0x5f8   :  { %v3280_v57 = vpop.eup %3279 }
 0x5f9   :  { %v665_v58 = vmul.f32 %v3280_v57, %v3272_v32 }
 0x5fb   :  { %3063 = vmatpush3.xpose.msk.msra.mxu1 %vm330_vm2, %v665_v58 }
 0x5fc   :  { %v3282_v59 = vpop.eup %3281  ;;  %3072 = vmatprep.subr.mxu1 %v3389_v38 }
 0x5fd   :  { %v667_v60 = vmul.f32 %v3282_v59, %v3274_v34 }
 0x5fe   :  { %3065 = vmatmul.mubr.msk.f32.vlgmr.msra.gmra.mrb[2].mxu1 %vm330_vm2, %v697_v37 }
 0x5ff   :  { %3073 = vmatpush3.xpose.msk.msra.mxu1 %vm330_vm2, %v667_v60  ;;  %3074 = vmatprep.mubr.msk.f32.mxu1 %vm3390_vm1, %v3389_v38 }
 0x600   :  { %3082 = vmatprep.subr.mxu1 %v3389_v38 }
 0x62c   :  { %v761_v61 = vpop.trf.xlu0 }
 0x62d   :  { %3075 = vmatmul.mubr.msk.f32.vlgmr.msra.gmra.mrb[4].mxu1 %vm330_vm2, %v761_v61 }
 0x62e   :  { %3084 = vmatprep.mubr.msk.f32.mxu1 %vm3390_vm1, %v3389_v38 }
 0x630   :  { %v793_v62 = vpop.trf.xlu0 }
 0x631   :  { %3080 = vmatmul.mubr.msk.f32.vlgmr.msra.gmra.mrb[10].mxu0 %vm330_vm2, %v793_v62 }
 0x632   :  { %3089 = vmatprep.mubr.msk.f32.mxu0 %vm3390_vm1, %v3389_v38 }
 0x634   :  { %v1429_v63 = vpop.trf.xlu0  ;;  %v1493_v2 = vpop.trf.xlu1 }
 0x635   :  { %3083 = vmatpush3.msra.mxu1 %v1429_v63 }
 0x636   :  { %3085 = vmatmul.mubr.msk.f32.vlgmr.msra.gmra.mrb[6].mxu1 %vm330_vm2, %v3498_v40  ;;  %3092 = vmatprep.subr.mxu1 %v3389_v38 }
 0x637   :  { %3093 = vmatpush3.msra.mxu1 %v1493_v2  ;;  %3094 = vmatprep.mubr.msk.f32.mxu1 %vm3390_vm1, %v3389_v38 }
 0x638   :  { %v1461_v3 = vpop.trf.xlu0  ;;  %3102 = vmatprep.subr.mxu1 %v3389_v38 }
 0x639   :  { %3088 = vmatpush3.msra.mxu0 %v1461_v3 }
 0x63a   :  { %3090 = vmatmul.mubr.msk.f32.vlgmr.msra.gmra.mrb[12].mxu0 %vm330_vm2, %v3549_v6  ;;  %3095 = vmatmul.mubr.msk.f32.vlgmr.msra.gmra.mrb[8].mxu1 %vm330_vm2, %v3557_v11 }
 0x63b   :  { %3097 = vmatprep.subr.mxu0 %v3389_v38  ;;  %3099 = vmatprep.mubr.msk.f32.mxu0 %vm3390_vm1, %v3389_v38 }
 0x63c   :  { %v1525_v4 = vpop.trf.xlu0  ;;  %3104 = vmatprep.mubr.msk.f32.mxu1 %vm3390_vm1, %v3389_v38 }
 0x63d   :  { %3098 = vmatpush3.msra.mxu0 %v1525_v4 }
 0x63e   :  { %3100 = vmatmul.mubr.msk.f32.vlgmr.msra.gmra.mrb[14].mxu0 %vm330_vm2, %v3553_v9  ;;  %3107 = vmatprep.subr.mxu0 %v3389_v38 }
 0x63f   :  { %3109 = vmatprep.mubr.msk.f32.mxu0 %vm3390_vm1, %v3389_v38 }
 0x6bb   :  { %v3609_v5 = vpop.f32.mrb[8].mxu0 }
 0x6bc   :  { %v3071_v7 = vpop.f32.mrb[9].mxu0 }
 0x6d1   :  { %v3611_v8 = vpop.f32.mrb[2].mxu1 }
 0x6d2   :  { %v3066_v10 = vpop.f32.mrb[3].mxu1 }
 0x700   :  { %v3613_v12 = vpop.f32.mrb[4].mxu1 }
 0x701   :  { %v3076_v13 = vpop.f32.mrb[5].mxu1 }
 0x704   :  { %v3615_v18 = vpop.f32.mrb[10].mxu0 }
 0x705   :  { %v3081_v20 = vpop.f32.mrb[11].mxu0 }
 0x709   :  { %v1609_v21 = vpop.f32.mrb[6].mxu1 }
 0x70a   :  { %v1829_v22 = vsel %vm3525_vm3, %v1609_v21, -1e+30  ;;  %v3086_v23 = vpop.f32.mrb[7].mxu1 }
 0x70b   :  { %v1833_v24 = vsel %vm330_vm2, %v1829_v22, -inf  ;;  %v3392_v23 = vmov 1983009808  }
 0x70c   :  { %1834 = vmax.xlane.f32.xlu1 %v1833_v24  ;;  %v1244_v24 = vunpack.c.l.s4 %v3392_v23  ;;  %v3258_v23 = vpack.i.bf16 %v3462_v19, %v3456_v16 }
 0x70d   :  { %v1681_v25 = vpop.f32.mrb[12].mxu0  ;;  %v1753_v26 = vpop.f32.mrb[8].mxu1 }
 0x70e   :  { %v1830_v27 = vsel %vm3525_vm3, %v1681_v25, -1e+30  ;;  %v1831_v28 = vsel %vm3525_vm3, %v1753_v26, -1e+30  ;;  %v3091_v29 = vpop.f32.mrb[13].mxu0  ;;  %v3096_v30 = vpop.f32.mrb[9].mxu1 }
 0x70f   :  { %v1839_v32 = vsel %vm330_vm2, %v1831_v28, -inf  ;;  %v1836_v33 = vsel %vm330_vm2, %v1830_v27, -inf }
 0x710   :  { %1840 = vmax.xlane.f32.xlu1 %v1839_v32  ;;  %1837 = vmax.xlane.f32.xlu0 %v1836_v33  ;;  %v3393_v32 = vmov 1934713408  }
 0x711   :  { %v1825_v34 = vpop.f32.mrb[14].mxu0  ;;  %v1276_v33 = vunpack.c.l.s4 %v3393_v32 }
 0x712   :  { %v1832_v36 = vsel %vm3525_vm3, %v1825_v34, -1e+30  ;;  %v3101_v35 = vpop.f32.mrb[15].mxu0 }
 0x713   :  { %v1842_v37 = vsel %vm330_vm2, %v1832_v36, -inf }
 0x714   :  { %1843 = vmax.xlane.f32.xlu1 %v1842_v37 }
 0x725   :  { %1879 = vrot.lane.b32.xlu1 %v3549_v6, %s3391_s11 }
 0x726   :  { %1877 = vrot.lane.b32.xlu0 %v3498_v40, %s3391_s11 }
 0x729   :  { %1881 = vrot.lane.b32.xlu1 %v3557_v11, %s3391_s11 }
 0x72d   :  { %1883 = vrot.lane.b32.xlu1 %v3553_v9, %s3391_s11 }
 0x799   :  { %v1835_v39 = vpop.xlane.xlu1 %1834 }
 0x79a   :  { %v1845_v41 = vsub.f32 %v1829_v22, %v1835_v39 }
 0x79c   :  { %v1849_v51 = vmul.f32 1.442695, %v1845_v41 }
 0x79d   :  { %v1841_v42 = vpop.xlane.xlu1 %1840  ;;  %v1838_v43 = vpop.xlane.xlu0 %1837 }
 0x79e   :  { %3283 = vpow2.f32 %v1849_v51  ;;  %v1847_v44 = vsub.f32 %v1831_v28, %v1841_v42  ;;  %v1846_v45 = vsub.f32 %v1830_v27, %v1838_v43  ;;  %v1245_v27 = vunpack.c.0.s8 %v1244_v24 }
 0x7a0   :  { %v1853_v46 = vmul.f32 1.442695, %v1847_v44  ;;  %v1851_v47 = vmul.f32 1.442695, %v1846_v45  ;;  %v3660_v30 = vsub.s32 %v1245_v27, %v3522_v49 }
 0x7a1   :  { %v1844_v6 = vpop.xlane.xlu1 %1843  ;;  %v1878_v58 = vpop.permute.xlu0 %1877 }
 0x7a2   :  { %3285 = vpow2.f32 %v1853_v46  ;;  %v1848_v48 = vsub.f32 %v1832_v36, %v1844_v6 }
 0x7a3   :  { %3287 = vpow2.f32 %v1851_v47 }
 0x7a4   :  { %v1855_v40 = vmul.f32 1.442695, %v1848_v48 }
 0x7a5   :  { %v1880_v57 = vpop.permute.xlu1 %1879 }
 0x7a6   :  { %3289 = vpow2.f32 %v1855_v40 }
 0x7a8   :  { %v3284_v11 = vpop.eup %3283 }
 0x7a9   :  { %v1857_v50 = vsel %vm330_vm2, %v3284_v11, 0.0  ;;  %v1882_v59 = vpop.permute.xlu1 %1881 }
 0x7aa   :  { %1858 = vadd.xlane.f32.xlu0 %v1857_v50 }
 0x7ac   :  { %v3286_v9 = vpop.eup %3285 }
 0x7ad   :  { %v3288_v52 = vpop.eup %3287  ;;  %v1863_v53 = vsel %vm330_vm2, %v3286_v9, 0.0  ;;  %v1884_v60 = vpop.permute.xlu1 %1883 }
 0x7ae   :  { %1864 = vadd.xlane.f32.xlu0 %v1863_v53  ;;  %v1860_v54 = vsel %vm330_vm2, %v3288_v52, 0.0 }
 0x7af   :  { %1861 = vadd.xlane.f32.xlu1 %v1860_v54 }
 0x7b0   :  { %v3290_v55 = vpop.eup %3289 }
 0x7b1   :  { %v1866_v56 = vsel %vm330_vm2, %v3290_v55, 0.0 }
 0x7b2   :  { %1867 = vadd.xlane.f32.xlu0 %v1866_v56 }
 0x7df   :  { %1889 = vxpose.xlu0.b32.start.end [1/1] (short) (narrow) %v1878_v58, 8 }
 0x7e2   :  { %1921 = vxpose.xlu1.b32.start.end [1/1] (short) (narrow) %v1880_v57, 8 }
 0x7e3   :  { %1953 = vxpose.xlu0.b32.start.end [1/1] (short) (narrow) %v1882_v59, 8 }
 0x7e6   :  { %1113 = vxpose.xlu1.b32.start.end [1/1] (short) (narrow) %v3611_v8, 8 }
 0x7e7   :  { %1985 = vxpose.xlu0.b32.start.end [1/1] (short) (narrow) %v1884_v60, 8 }
 0x7ea   :  { %1177 = vxpose.xlu1.b32.start.end [1/1] (short) (narrow) %v3613_v12, 8 }
 0x7eb   :  { %1145 = vxpose.xlu0.b32.start.end [1/1] (short) (narrow) %v3609_v5, 8 }
 0x7ef   :  { %1209 = vxpose.xlu0.b32.start.end [1/1] (short) (narrow) %v3615_v18, 8 }
 0x837   :  { %v1859_v61 = vpop.xlane.xlu0 %1858 }
 0x838   :  { %3291 = vrcp.f32 %v1859_v61 }
 0x83b   :  { %v1865_v7 = vpop.xlane.xlu0 %1864 }
 0x83c   :  { %v1862_v62 = vpop.xlane.xlu1 %1861 }
 0x83d   :  { %3293 = vrcp.f32 %v1862_v62 }
 0x83e   :  { %3295 = vrcp.f32 %v1865_v7 }
 0x83f   :  { %v1868_v5 = vpop.xlane.xlu0 %1867 }
 0x840   :  { %3297 = vrcp.f32 %v1868_v5 }
 0x842   :  { %v3292_v63 = vpop.eup %3291 }
 0x843   :  { %v1873_v2 = vmul.f32 %v3292_v63, %v3284_v11 }
 0x845   :  { %3103 = vmatpush3.xpose.msk.msra.mxu1 %vm330_vm2, %v1873_v2 }
 0x846   :  { %3112 = vmatprep.subr.mxu1 %v3389_v38 }
 0x847   :  { %v3294_v3 = vpop.eup %3293 }
 0x848   :  { %v1874_v4 = vmul.f32 %v3294_v3, %v3288_v52  ;;  %v3296_v8 = vpop.eup %3295 }
 0x849   :  { %v1875_v12 = vmul.f32 %v3296_v8, %v3286_v9 }
 0x84a   :  { %3108 = vmatpush3.xpose.msk.msra.mxu0 %vm330_vm2, %v1874_v4  ;;  %v3298_v10 = vpop.eup %3297 }
 0x84b   :  { %3117 = vmatprep.subr.mxu0 %v3389_v38  ;;  %v1876_v18 = vmul.f32 %v3298_v10, %v3290_v55 }
 0x85f   :  { %v1905_v13 = vpop.trf.xlu0 }
 0x860   :  { %3105 = vmatmul.mubr.msk.f32.vlgmr.msra.gmra.mrb[10].mxu1 %vm330_vm2, %v1905_v13 }
 0x861   :  { %3113 = vmatpush3.xpose.msk.msra.mxu1 %vm330_vm2, %v1875_v12  ;;  %3114 = vmatprep.mubr.msk.f32.mxu1 %vm3390_vm1, %v3389_v38 }
 0x862   :  { %v1937_v20 = vpop.trf.xlu1 }
 0x863   :  { %3110 = vmatmul.mubr.msk.f32.vlgmr.msra.gmra.mrb[16].mxu0 %vm330_vm2, %v1937_v20  ;;  %v1969_v21 = vpop.trf.xlu0 }
 0x864   :  { %3118 = vmatpush3.xpose.msk.msra.mxu0 %vm330_vm2, %v1876_v18  ;;  %3115 = vmatmul.mubr.msk.f32.vlgmr.msra.gmra.mrb[12].mxu1 %vm330_vm2, %v1969_v21 }
 0x865   :  { %3119 = vmatprep.mubr.msk.f32.mxu0 %vm3390_vm1, %v3389_v38  ;;  %v1277_v38 = vunpack.c.0.s8 %v1276_v33 }
 0x866   :  { %v1129_v25 = vpop.trf.xlu1 }
 0x867   :  { %v2001_v22 = vpop.trf.xlu0  ;;  %v3667_v43 = vsub.s32 %v1277_v38, %v3522_v49 }
 0x868   :  { %3120 = vmatmul.mubr.msk.f32.vlgmr.msra.gmra.mrb[18].mxu0 %vm330_vm2, %v2001_v22 }
 0x86a   :  { %v1193_v28 = vpop.trf.xlu1 }
 0x86b   :  { %v1161_v26 = vpop.trf.xlu0  ;;  %v1241_v34 = vcombine.low %v1129_v25, %v1193_v28  ;;  %v1242_v36 = vcombine.high %v1129_v25, %v1193_v28 }
 0x86d   :  { %v1249_v39 = vrot.slane %v1241_v34, %v3660_v30  ;;  %v1256_v41 = vrot.slane %v1242_v36, %v3660_v30 }
 0x86f   :  { %v1225_v29 = vpop.trf.xlu0 }
 0x870   :  { %v1257_v35 = vcombine.low %v1161_v26, %v1225_v29  ;;  %v1258_v37 = vcombine.high %v1161_v26, %v1225_v29 }
 0x872   :  { %v1265_v51 = vrot.slane %v1257_v35, %v3660_v30  ;;  %v1272_v42 = vrot.slane %v1258_v37, %v3660_v30 }
 0x874   :  { %v1273_v44 = vcombine.low %v1249_v39, %v1265_v51  ;;  %v1274_v45 = vcombine.high %v1249_v39, %v1265_v51  ;;  %v1289_v46 = vcombine.low %v1256_v41, %v1272_v42  ;;  %v1290_v47 = vcombine.high %v1256_v41, %v1272_v42 }
 0x876   :  { %v1281_v6 = vrot.slane %v1273_v44, %v3667_v43  ;;  %v1288_v48 = vrot.slane %v1274_v45, %v3667_v43  ;;  %v1297_v40 = vrot.slane %v1289_v46, %v3667_v43  ;;  %v1304_v11 = vrot.slane %v1290_v47, %v3667_v43 }
 0x878   :  { %v1309_v50 = vcombine.low %v1281_v6, %v1288_v48  ;;  %v2943_v9 = vcombine.high %v1281_v6, %v1288_v48  ;;  %v1325_v52 = vcombine.low %v1297_v40, %v1304_v11  ;;  %v2944_v53 = vcombine.high %v1297_v40, %v1304_v11 }
 0x87a   :  { %v1316_v54 = vrot.slane %v1309_v50, %v3660_v30  ;;  %v1324_v49 = vrot.slane %v2943_v9, %v3660_v30  ;;  %v1332_v55 = vrot.slane %v1325_v52, %v3660_v30  ;;  %v1340_v56 = vrot.slane %v2944_v53, %v3660_v30 }
 0x87c   :  { %v1341_v57 = vcombine.low %v1316_v54, %v1324_v49  ;;  %v1357_v58 = vcombine.low %v1332_v55, %v1340_v56  ;;  %v1342_v10 = vcombine.high %v1316_v54, %v1324_v49  ;;  %v1358_v12 = vcombine.high %v1332_v55, %v1340_v56 }
 0x87e   :  { %v3678_v59 = vrot.slane %v1341_v57, %v3667_v43  ;;  %v3681_v60 = vrot.slane %v1357_v58, %v3667_v43  ;;  %v1356_v18 = vrot.slane %v1342_v10, %v3667_v43  ;;  %v1372_v20 = vrot.slane %v1358_v12, %v3667_v43 }
 0x880   :  { %v1373_v61 = vcombine.low %v3678_v59, %v3681_v60  ;;  %v1374_v13 = vcombine.high %v3678_v59, %v3681_v60  ;;  %v1375_v21 = vcombine.low %v1356_v18, %v1372_v20  ;;  %v1376_v22 = vcombine.high %v1356_v18, %v1372_v20 }
 0x933   :  { %v2089_v62 = vpop.f32.mrb[10].mxu1 }
 0x934   :  { %2321 = vxpose.xlu1.b32.start.end [1/1] (short) (narrow) %v2089_v62, 8  ;;  %v3106_v63 = vpop.f32.mrb[11].mxu1 }
 0x936   :  { %v2165_v2 = vpop.f32.mrb[16].mxu0 }
 0x937   :  { %v2241_v3 = vpop.f32.mrb[12].mxu1  ;;  %2353 = vxpose.xlu0.b32.start.end [1/1] (short) (narrow) %v2165_v2, 8  ;;  %v3111_v4 = vpop.f32.mrb[17].mxu0 }
 0x938   :  { %2385 = vxpose.xlu1.b32.start.end [1/1] (short) (narrow) %v2241_v3, 8  ;;  %v3116_v7 = vpop.f32.mrb[13].mxu1 }
 0x93b   :  { %v2317_v5 = vpop.f32.mrb[18].mxu0 }
 0x93c   :  { %2417 = vxpose.xlu0.b32.start.end [1/1] (short) (narrow) %v2317_v5, 8  ;;  %v3121_v8 = vpop.f32.mrb[19].mxu0 }
 0x956   :  { %3254 = vrot.lane.b32.xlu1 %v3253_v17, %s3394_s12 }
 0x95a   :  { %1378 = vrot.lane.b32.xlu1 %v1374_v13, %s3381_s20 }
 0x95e   :  { %1382 = vrot.lane.b32.xlu1 %v1375_v21, %s3384_s5 }
 0x962   :  { %1386 = vrot.lane.b32.xlu1 %v1376_v22, %s3395_s13 }
 0x965   :  { %3259 = vrot.lane.b32.xlu0 %v3258_v23, %s3394_s12 }
 0x9b4   :  { %v2337_v14 = vpop.trf.xlu1 }
 0x9b7   :  { %v2369_v15 = vpop.trf.xlu0 }
 0x9b8   :  { %v2401_v17 = vpop.trf.xlu1 }
 0x9b9   :  { %v2449_v24 = vcombine.low %v2337_v14, %v2401_v17  ;;  %v2450_v25 = vcombine.high %v2337_v14, %v2401_v17 }
 0x9bb   :  { %v2457_v29 = vrot.slane %v2449_v24, %v3660_v30  ;;  %v2464_v32 = vrot.slane %v2450_v25, %v3660_v30 }
 0x9bc   :  { %v2433_v26 = vpop.trf.xlu0 }
 0x9bd   :  { %v2465_v27 = vcombine.low %v2369_v15, %v2433_v26  ;;  %v2466_v28 = vcombine.high %v2369_v15, %v2433_v26 }
 0x9bf   :  { %v2473_v33 = vrot.slane %v2465_v27, %v3660_v30  ;;  %v2480_v16 = vrot.slane %v2466_v28, %v3660_v30 }
 0x9c1   :  { %v2481_v19 = vcombine.low %v2457_v29, %v2473_v33  ;;  %v2482_v34 = vcombine.high %v2457_v29, %v2473_v33  ;;  %v2497_v36 = vcombine.low %v2464_v32, %v2480_v16  ;;  %v2498_v35 = vcombine.high %v2464_v32, %v2480_v16 }
 0x9c3   :  { %v2489_v37 = vrot.slane %v2481_v19, %v3667_v43  ;;  %v2496_v38 = vrot.slane %v2482_v34, %v3667_v43  ;;  %v2505_v39 = vrot.slane %v2497_v36, %v3667_v43  ;;  %v2512_v41 = vrot.slane %v2498_v35, %v3667_v43  ;;  %v46_v35 = vld [vmem:[#allocation5 + $0x8] sm:$0xff] }
 0x9c5   :  { %v2517_v51 = vcombine.low %v2489_v37, %v2496_v38  ;;  %v2957_v42 = vcombine.high %v2489_v37, %v2496_v38  ;;  %v2533_v44 = vcombine.low %v2505_v39, %v2512_v41  ;;  %v2958_v45 = vcombine.high %v2505_v39, %v2512_v41  ;;  %v47_v37 = vld [vmem:[#allocation5 + $0x18] sm:$0xff]  ;;  %v48_v39 = vld [vmem:[#allocation5 + $0x28] sm:$0xff] }
 0x9c6   :  { %v3195_v38 = vpack.c.bf16 %v47_v37, %v46_v35  ;;  %v49_v41 = vld [vmem:[#allocation5 + $0x38] sm:$0xff]  ;;  %v68_v37 = vld [vmem:[#allocation5 + $0x141] ss:$0 sm:$0xff] }
 0x9c7   :  { %v2524_v46 = vrot.slane %v2517_v51, %v3660_v30  ;;  %v2532_v47 = vrot.slane %v2957_v42, %v3660_v30  ;;  %v2540_v6 = vrot.slane %v2533_v44, %v3660_v30  ;;  %v2548_v48 = vrot.slane %v2958_v45, %v3660_v30  ;;  %v50_v42 = vld [vmem:[#allocation5 + $0x40] sm:$0xff]  ;;  %v51_v44 = vld [vmem:[#allocation5 + $0x50] sm:$0xff] }
 0x9c8   :  { %v3255_v40 = vpop.permute.xlu1 %3254  ;;  %v3199_v51 = vpack.c.bf16 %v49_v41, %v48_v39  ;;  %v3203_v45 = vpack.c.bf16 %v51_v44, %v50_v42 }
 0x9c9   :  { %v3257_v11 = vunpack.i.h.bf16 %v3255_v40  ;;  %v3256_v50 = vunpack.i.l.bf16 %v3255_v40  ;;  %v2550_v9 = vcombine.high %v2524_v46, %v2532_v47  ;;  %v2566_v52 = vcombine.high %v2540_v6, %v2548_v48 }
 0x9ca   :  { %v2549_v53 = vcombine.low %v2524_v46, %v2532_v47  ;;  %v2565_v54 = vcombine.low %v2540_v6, %v2548_v48  ;;  %3204 = vmatprep.subr.bf16.mxu1 %v3203_v45 }
 0x9cb   :  { %v3187_v49 = vpack.c.bf16 %v3257_v11, %v3256_v50  ;;  %v2564_v55 = vrot.slane %v2550_v9, %v3667_v43  ;;  %v2580_v56 = vrot.slane %v2566_v52, %v3667_v43  ;;  %3206 = vmatpush3.bf16.msra.mxu1 %v3203_v45 }
 0x9cc   :  { %v1379_v57 = vpop.permute.xlu1 %1378  ;;  %v2557_v58 = vrot.slane %v2549_v53, %v3667_v43  ;;  %v2573_v62 = vrot.slane %v2565_v54, %v3667_v43  ;;  %v52_v54 = vld [vmem:[#allocation5 + $0x60] sm:$0xff] }
 0x9cd   :  { %v2583_v63 = vcombine.low %v2564_v55, %v2580_v56  ;;  %3188 = vmatprep.subr.bf16.mxu0 %v3187_v49  ;;  %v2584_v4 = vcombine.high %v2564_v55, %v2580_v56  ;;  %v1389_v7 = vsel %vm330_vm2, %v1373_v61, %v1379_v57  ;;  %v54_v56 = vld [vmem:[#allocation5 + $0x80] sm:$0xff]  ;;  %v55_v57 = vld [vmem:[#allocation5 + $0x90] sm:$0xff] }
 0x9ce   :  { %v2582_v30 = vcombine.high %v2557_v58, %v2573_v62  ;;  %v2581_v2 = vcombine.low %v2557_v58, %v2573_v62  ;;  %3190 = vmatpush3.bf16.msra.mxu0 %v3187_v49  ;;  %v53_v49 = vld [vmem:[#allocation5 + $0x70] sm:$0xff]  ;;  %v3211_v58 = vpack.c.bf16 %v55_v57, %v54_v56  ;;  %v56_v62 = vld [vmem:[#allocation5 + $0xa0] sm:$0xff] }
 0x9cf   :  { %2590 = vrot.lane.b32.xlu0 %v2583_v63, %s3384_s5  ;;  %v3207_v55 = vpack.c.bf16 %v53_v49, %v52_v54  ;;  %v57_v63 = vld [vmem:[#allocation5 + $0xb0] sm:$0xff] }
 0x9d0   :  { %2586 = vrot.lane.b32.xlu1 %v2582_v30, %s3381_s20  ;;  %v1383_v3 = vpop.permute.xlu1 %1382  ;;  %v3215_v30 = vpack.c.bf16 %v57_v63, %v56_v62 }
 0x9d1   :  { %v1391_v43 = vsel %vm1390_vm4, %v1389_v7, %v1383_v3  ;;  %3208 = vmatprep.subr.bf16.mxu1 %v3207_v55  ;;  %v59_v3 = vld [vmem:[#allocation5 + $0xd0] sm:$0xff]  ;;  %v60_v7 = vld [vmem:[#allocation5 + $0xe0] sm:$0xff] }
 0x9d2   :  { %3210 = vmatpush3.bf16.msra.mxu1 %v3207_v55 }
 0x9d3   :  { %2700 = vrot.lane.b32.xlu0 %v3468_v31, %s3394_s12  ;;  %3212 = vmatprep.subr.bf16.mxu1 %v3211_v58 }
 0x9d4   :  { %2594 = vrot.lane.b32.xlu1 %v2584_v4, %s3395_s13  ;;  %v1387_v5 = vpop.permute.xlu1 %1386 }
 0x9d5   :  { %v1393_v8 = vsel %vm1392_vm5, %v1391_v43, %v1387_v5  ;;  %v61_v43 = vld [vmem:[#allocation5 + $0xf0] sm:$0xff] }
 0x9d6   :  { %3130 = vmatprep.mubr.msk.f32.mxu0 %vm69_vm0, %v1393_v8  ;;  %3214 = vmatpush3.bf16.msra.mxu1 %v3211_v58  ;;  %v3223_v5 = vpack.c.bf16 %v61_v43, %v60_v7  ;;  %v62_v8 = vld [vmem:[#allocation5 + $0x100] sm:$0xff] }
 0x9d7   :  { %v3260_v10 = vpop.permute.xlu0 %3259  ;;  %3216 = vmatprep.subr.bf16.mxu1 %v3215_v30 }
 0x9d8   :  { %v3262_v12 = vunpack.i.h.bf16 %v3260_v10  ;;  %v3261_v13 = vunpack.i.l.bf16 %v3260_v10  ;;  %v63_v10 = vld [vmem:[#allocation5 + $0x110] sm:$0xff] }
 0x9da   :  { %v3191_v18 = vpack.c.bf16 %v3262_v12, %v3261_v13  ;;  %3218 = vmatpush3.bf16.msra.mxu1 %v3215_v30  ;;  %v3227_v12 = vpack.c.bf16 %v63_v10, %v62_v8  ;;  %v64_v13 = vld [vmem:[#allocation5 + $0x120] sm:$0xff] }
 0x9dc   :  { %3192 = vmatprep.subr.bf16.mxu0 %v3191_v18 }
 0x9dd   :  { %3194 = vmatpush3.bf16.msra.mxu0 %v3191_v18  ;;  %v65_v18 = vld [vmem:[#allocation5 + $0x130] sm:$0xff] }
 0x9de   :  { %3196 = vmatprep.subr.bf16.mxu0 %v3195_v38 }
 0xa41   :  { %v2591_v61 = vpop.permute.xlu0 %2590 }
 0xa42   :  { %v2587_v59 = vpop.permute.xlu1 %2586 }
 0xa43   :  { %v2597_v60 = vsel %vm330_vm2, %v2581_v2, %v2587_v59  ;;  %v58_v2 = vld [vmem:[#allocation5 + $0xc0] sm:$0xff]  ;;  %v3231_v59 = vpack.c.bf16 %v65_v18, %v64_v13 }
 0xa44   :  { %v2598_v31 = vsel %vm1390_vm4, %v2597_v60, %v2591_v61  ;;  %v3219_v4 = vpack.c.bf16 %v59_v3, %v58_v2  ;;  %v67_v60 = vld [vmem:[#allocation5 + $0x148] ss:$0 sm:$0xff] }
 0xa45   :  { %v2701_v23 = vpop.permute.xlu0 %2700 }
 0xa46   :  { %v2595_v20 = vpop.permute.xlu1 %2594  ;;  %3220 = vmatprep.subr.bf16.mxu1 %v3219_v4 }
 0xa47   :  { %v2599_v21 = vsel %vm1392_vm5, %v2598_v31, %v2595_v20  ;;  %3222 = vmatpush3.bf16.msra.mxu1 %v3219_v4 }
 0xa48   :  { %3131 = vmatmul.mubr.msk.f32.vlgmr.msra.gmra.mrb[20].mxu0 %vm69_vm0, %v2599_v21  ;;  %3224 = vmatprep.subr.bf16.mxu1 %v3223_v5 }
 0xa49   :  { %3198 = vmatpush3.bf16.msra.mxu0 %v3195_v38 }
 0xa4a   :  { %3200 = vmatprep.subr.bf16.mxu0 %v3199_v51 }
 0xa4b   :  { %3226 = vmatpush3.bf16.msra.mxu1 %v3223_v5 }
 0xa4c   :  { %3228 = vmatprep.subr.bf16.mxu1 %v3227_v12 }
 0xa4d   :  { %3202 = vmatpush3.bf16.msra.mxu0 %v3199_v51 }
 0xa4f   :  { %3230 = vmatpush3.bf16.msra.mxu1 %v3227_v12 }
 0xa50   :  { %3232 = vmatprep.subr.bf16.mxu1 %v3231_v59 }
 0xa53   :  { %3234 = vmatpush3.bf16.msra.mxu1 %v3231_v59 }
 0xb1b   :  { %v3132_v22 = vpop.f32.mrb[20].mxu0 }
 0xb1c   :  { %v2698_v14 = vadd.f32 %v3132_v22, %v3442_v1  ;;  %v2688_v15 = vpop.f32.mrb[21].mxu0 }
 0xb1d   :  { %v2697_v17 = vadd.f32 %v2688_v15, %v3440_v0 }
 0xb1e   :  { %v3733_v24 = vadd.f32 %v2701_v23, %v2698_v14 }
 0xb1f   :  { %v3735_v25 = vadd.f32 %v2701_v23, %v2697_v17 }
 0xb20   :  { %v2708_v26 = vsel %vm69_vm0, %v3733_v24, 0.0 }
 0xb21   :  { %2709 = vadd.xlane.f32.xlu0 %v2708_v26  ;;  %v2705_v27 = vsel %vm69_vm0, %v3735_v25, 0.0 }
 0xb22   :  { %2706 = vadd.xlane.f32.xlu1 %v2705_v27 }
 0xbae   :  { %v2710_v28 = vpop.xlane.xlu0 %2709 }
 0xbaf   :  { %v2712_v29 = vmul.f32 0.03125, %v2710_v28  ;;  %v2707_v32 = vpop.xlane.xlu1 %2706 }
 0xbb0   :  { %v2711_v33 = vmul.f32 0.03125, %v2707_v32 }
 0xbb1   :  { %v2714_v1 = vsub.f32 %v3733_v24, %v2712_v29 }
 0xbb2   :  { %v2713_v0 = vsub.f32 %v3735_v25, %v2711_v33 }
 0xbb3   :  { %v2716_v34 = vmul.f32 %v2714_v1, %v2714_v1 }
 0xbb4   :  { %v2715_v16 = vmul.f32 %v2713_v0, %v2713_v0 }
 0xbb5   :  { %v2720_v36 = vsel %vm69_vm0, %v2716_v34, 0.0 }
 0xbb6   :  { %v2717_v19 = vsel %vm69_vm0, %v2715_v16, 0.0 }
 0xbb7   :  { %2718 = vadd.xlane.f32.xlu0 %v2717_v19 }
 0xbbb   :  { %2721 = vadd.xlane.f32.xlu0 %v2720_v36 }
 0xc44   :  { %v2719_v46 = vpop.xlane.xlu0 %2718 }
 0xc45   :  { %v2723_v47 = vmul.f32 0.03125, %v2719_v46 }
 0xc47   :  { %v2725_v6 = vadd.f32 1e-05, %v2723_v47 }
 0xc48   :  { %v2722_v48 = vpop.xlane.xlu0 %2721 }
 0xc49   :  { %3299 = vrsqrt.f32 %v2725_v6  ;;  %v2724_v40 = vmul.f32 0.03125, %v2722_v48 }
 0xc4b   :  { %v2726_v11 = vadd.f32 1e-05, %v2724_v40 }
 0xc4d   :  { %3301 = vrsqrt.f32 %v2726_v11 }
 0xc53   :  { %v3300_v50 = vpop.eup %3299 }
 0xc54   :  { %v2729_v9 = vmul.f32 %v3300_v50, %v2713_v0 }
 0xc56   :  { %3141 = vmatprep.mubr.msk.f32.mxu0 %vm69_vm0, %v2729_v9 }
 0xc57   :  { %v3302_v52 = vpop.eup %3301 }
 0xc58   :  { %v2730_v53 = vmul.f32 %v3302_v52, %v2714_v1 }
 0xc5a   :  { %3142 = vmatmul.mubr.msk.f32.vlgmr.msra.gmra.mrb[22].mxu0 %vm69_vm0, %v2730_v53 }
 0xd2d   :  { %v3143_v61 = vpop.f32.mrb[22].mxu0 }
 0xd2e   :  { %v2809_v31 = vadd.f32 %v3143_v61, %v67_v60  ;;  %v2803_v20 = vpop.f32.mrb[23].mxu0 }
 0xd2f   :  { %v2804_v21 = vadd.f32 %v2803_v20, %v67_v60 }
 0xd30   :  { %v2815_v22 = vmul.f32 0.044715, %v2809_v31  ;;  %v2813_v34 = vmul.f32 0.5, %v2809_v31 }
 0xd31   :  { %v2814_v23 = vmul.f32 0.044715, %v2804_v21  ;;  %v2812_v16 = vmul.f32 0.5, %v2804_v21 }
 0xd32   :  { %v2817_v14 = vmul.f32 %v2815_v22, %v2809_v31 }
 0xd33   :  { %v2816_v15 = vmul.f32 %v2814_v23, %v2804_v21 }
 0xd34   :  { %v2819_v17 = vmul.f32 %v2817_v14, %v2809_v31 }
 0xd35   :  { %v2818_v26 = vmul.f32 %v2816_v15, %v2804_v21 }
 0xd36   :  { %v2821_v27 = vadd.f32 %v2819_v17, %v2809_v31 }
 0xd37   :  { %v2820_v28 = vadd.f32 %v2818_v26, %v2804_v21 }
 0xd38   :  { %v2823_v29 = vmul.f32 0.7978846, %v2821_v27 }
 0xd39   :  { %v2822_v32 = vmul.f32 0.7978846, %v2820_v28 }
 0xd3a   :  { %3303 = vtanh.f32 %v2823_v29 }
 0xd3b   :  { %3305 = vtanh.f32 %v2822_v32 }
 0xd44   :  { %v3304_v33 = vpop.eup %3303 }
 0xd45   :  { %v3306_v1 = vpop.eup %3305  ;;  %v2827_v0 = vadd.f32 1.0, %v3304_v33 }
 0xd46   :  { %v2826_v19 = vadd.f32 1.0, %v3306_v1 }
 0xd47   :  { %v2829_v35 = vmul.f32 %v2827_v0, %v2813_v34 }
 0xd48   :  { %v2828_v36 = vmul.f32 %v2826_v19, %v2812_v16 }
 0xd4a   :  { %3176 = vmatprep.mubr.f32.mxu1 %v2828_v36 }
 0xd4b   :  { %3177 = vmatmul.mubr.f32.vlgmr.msra.gmra.mrb[14].mxu1 %v2829_v35 }
 0xe1e   :  { %v3178_v38 = vpop.f32.mrb[14].mxu1 }
 0xe1f   :  { %v2906_v39 = vadd.f32 %v3178_v38, %v3733_v24  ;;  %v2896_v41 = vpop.f32.mrb[15].mxu1 }
 0xe20   :  { %v2905_v51 = vadd.f32 %v2896_v41, %v3735_v25 }
 0xe21   :  { %v2908_v42 = vadd.f32 %v2906_v39, %v68_v37 }
 0xe22   :  { %v2907_v44 = vadd.f32 %v2905_v51, %v68_v37 }
 0xe23   :  { %2910 = vst.msk [vmem:[#allocation7 + $0x8] sm:$0xff] %vm69_vm0, %v2908_v42 }
 0xe24   :  { %2909 = vst.msk [vmem:[#allocation7] sm:$0xff] %vm69_vm0, %v2907_v44 }
 0xe25   :  { %3362 = shalt.err (!%p3359_p6)
}
 0xe26   :  { %s3363_s21 = scalar_lea.hbm %s3768_s2, 256 }
 0xe27   :  { %p3364_p7 = scmp.ne.s32.totalorder %s3768_s2, %s3363_s21  ;;  %p3367_p8 = scmp.lt.u32.totalorder %s3363_s21, %s3768_s2 }
 0xe29   :  { %p3369_p9 = pnand %p3367_p8, %p3364_p7 }
 0xe2b   :  { %3372 = shalt.err (!%p3369_p9)
}
 0xe2c   :  { %2922 = dma.vmem_to_hbm [thread:$0]  %s2917_s15, 256, %s3768_s2, [#allocation4], %s3380_s19, %s3380_s19, %s3381_s20  }
 0xe2d   :  { %3377 = dma.done.wait [#allocation4], 256  }
 0xe2e   :  { %3378 = vsyncadd [#allocation4], 4294967040 }
 0xe2f   :  { %2926 = vsyncpa [#allocation3], 1 }
 0xe30   :  { %2927 = vsyncpa [#allocation6], 1 }
 0xe31   :  { %2928 = vsyncpa [#allocation4], 1 }

</bundles_post_ra>
